<compile_context>
chip_gen: v7x
topology: tpu7x:2x2x1
jax: 0.10.0
libtpu: 0.0.40
codegen_flags: <defaults>
</compile_context>

<pallas_src>
import functools

import jax
import jax.numpy as jnp
from jax import lax
from jax.experimental import pallas as pl
from jax.experimental.pallas import tpu as pltpu

_LANES = 128
_SUBLANES = 8
_TM_MAX = 8192        # rows per tile: (8192, 128) f32 = 4 MiB per input block
_ACC_ROWS_MAX = 64    # 8 independent (8,128) accumulator vregs


def _exp_diff_abs_kernel(yp_ref, yt_ref, out_ref, acc_ref, *,
                         penalty_factor, tm, blocks_per_core, n_blocks,
                         rows_valid, acc_rows, has_partial, has_duplicate):
    c = pl.program_id(0)          # core (parallel axis)
    k = pl.program_id(1)          # reduction step within this core's row range
    block_idx = c * blocks_per_core + k

    @pl.when(k == 0)
    def _():
        acc_ref[...] = jnp.zeros_like(acc_ref)

    def compute_weighted():
        yp = yp_ref[...].astype(jnp.float32)
        yt = yt_ref[...].astype(jnp.float32)
        diff = yp - yt
        sq = diff * diff
        penalty = jnp.exp(jnp.abs(yt) - jnp.abs(yp))       # EUP (free slot)
        return sq + penalty_factor * (sq * penalty)        # == sq*(1+pf*penalty)

    def accumulate(w):
        # Wide lane/sublane-resident partial sums: 8 independent accumulator
        # vregs -> the per-step adds pipeline across the 4 VALU slots.
        if tm % acc_rows == 0:
            acc_ref[...] += w.reshape(tm // acc_rows, acc_rows, _LANES).sum(axis=0)
        else:
            # Tiny-input fallback (rows < 8 or odd row count): one sublane reduce.
            acc_ref[0:1, :] += w.sum(axis=0, keepdims=True)

    if has_partial:
        # Fast path for full, genuine blocks: no mask work at all.
        @pl.when(block_idx < n_blocks - 1)
        def _():
            accumulate(compute_weighted())

        # The single genuinely-partial block: mask rows past the valid range.
        # Select (not multiply) so inf/nan from garbage OOB rows cannot leak.
        @pl.when(block_idx == n_blocks - 1)
        def _():
            w = compute_weighted()
            row = (n_blocks - 1) * tm + lax.broadcasted_iota(
                jnp.int32, (tm, _LANES), 0)
            w = jnp.where(row < rows_valid, w, 0.0)
            accumulate(w)
        # block_idx >= n_blocks (clamped duplicate step): accumulation skipped.
    elif has_duplicate:
        # Skip the clamped duplicate block's compute entirely.
        @pl.when(block_idx < n_blocks)
        def _():
            accumulate(compute_weighted())
    else:
        accumulate(compute_weighted())

    @pl.when(k == pl.num_programs(1) - 1)
    def _():
        out_ref[0] = acc_ref[...]


def exp_diff_abs_loss(y_pred, y_true, penalty_factor):
    """Pallas TPU implementation of Exp_diff_abs.forward (scalar f32 loss)."""
    assert y_pred.shape == y_true.shape
    n_elem = int(y_pred.size)

    yp = jnp.asarray(y_pred).reshape(-1)   # keep native dtype (no f32 HBM pass)
    yt = jnp.asarray(y_true).reshape(-1)

    # Only pad when numel is not a multiple of 128 (rare for NCHW tensors).
    # Padded entries have y_pred == y_true == 0 -> weighted error is exactly 0.
    pad = (-n_elem) % _LANES
    if pad:
        yp = jnp.pad(yp, (0, pad))
        yt = jnp.pad(yt, (0, pad))

    rows = yp.size // _LANES
    yp2 = yp.reshape(rows, _LANES)
    yt2 = yt.reshape(rows, _LANES)

    tm = min(_TM_MAX, rows)                     # large tiles; full-dim if small
    n_blocks = pl.cdiv(rows, tm)
    n_cores = 2 if n_blocks >= 2 else 1         # 2-way split only pays on v7x
    blocks_per_core = pl.cdiv(n_blocks, n_cores)

    has_partial = (rows % tm) != 0              # exactly one partial last block
    has_duplicate = (n_cores * blocks_per_core) != n_blocks

    # Accumulator width: as many independent (8,128) vregs as tm allows.
    if tm % _ACC_ROWS_MAX == 0:
        acc_rows = _ACC_ROWS_MAX
    else:
        acc_rows = _SUBLANES  # general / fallback path

    def in_map(c, k):
        # Clamp so DMAs never start past the last block; the clamped duplicate
        # step skips accumulation inside the kernel.
        return (jnp.minimum(c * blocks_per_core + k, n_blocks - 1), 0)

    kernel = functools.partial(
        _exp_diff_abs_kernel,
        penalty_factor=float(penalty_factor),
        tm=tm,
        blocks_per_core=blocks_per_core,
        n_blocks=n_blocks,
        rows_valid=rows,
        acc_rows=acc_rows,
        has_partial=has_partial,
        has_duplicate=has_duplicate,
    )

    partials = pl.pallas_call(
        kernel,
        out_shape=jax.ShapeDtypeStruct((n_cores, acc_rows, _LANES), jnp.float32),
        grid_spec=pltpu.PrefetchScalarGridSpec(
            num_scalar_prefetch=0,
            grid=(n_cores, blocks_per_core),
            in_specs=[
                pl.BlockSpec((tm, _LANES), in_map),
                pl.BlockSpec((tm, _LANES), in_map),
            ],
            out_specs=pl.BlockSpec((1, acc_rows, _LANES), lambda c, k: (c, 0, 0)),
            scratch_shapes=[pltpu.VMEM((acc_rows, _LANES), jnp.float32)],
        ),
        compiler_params=pltpu.CompilerParams(
            dimension_semantics=("parallel", "arbitrary"),
            vmem_limit_bytes=32 * 1024 * 1024,
        ),
    )(yp2, yt2)

    # Tiny final reduction (n_cores x acc_rows x 128 partials) + mean over the
    # true element count.
    return jnp.sum(partials) / jnp.float32(n_elem)


if __name__ == "__main__":
    key = jax.random.PRNGKey(0)
    k1, k2 = jax.random.split(key)

    # Small NCHW-shaped prediction/target pair, as the module's forward implies.
    shape = (2, 4, 16, 16)
    y_pred = jax.random.normal(k1, shape, dtype=jnp.float32)
    y_true = jax.random.normal(k2, shape, dtype=jnp.float32)
    penalty_factor = 0.5

    loss = exp_diff_abs_loss(y_pred, y_true, penalty_factor)
    loss = jax.block_until_ready(loss)

    # Pure-JAX reference check (same math as the PyTorch Exp_diff_abs module).
    se = (y_pred - y_true) ** 2
    penalty = jnp.exp(jnp.abs(y_true) - jnp.abs(y_pred))
    ref = jnp.mean(se * (1.0 + penalty_factor * penalty))
    assert jnp.allclose(loss, ref, rtol=1e-5, atol=1e-6), (loss, ref)

    print("KERNEL_OK")
</pallas_src>

<mosaic_0001>
module attributes {stable_mosaic.version = 11 : i64} {
  func.func @_exp_diff_abs_kernel(%arg0: i32, %arg1: i32, %arg2: memref<16x128xf32, #tpu.memory_space<vmem>>, %arg3: memref<16x128xf32, #tpu.memory_space<vmem>>, %arg4: memref<1x8x128xf32, #tpu.memory_space<vmem>>, %arg5: memref<8x128xf32, #tpu.memory_space<vmem>>) attributes {dimension_semantics = [#tpu.dimension_semantics<parallel>, #tpu.dimension_semantics<arbitrary>], iteration_bounds = array<i64: 1, 1>, scalar_prefetch = 0 : i64, scratch_operands = 1 : i64, tpu.core_type = #tpu.core_type<tc>, window_params = [{transform_indices = @transform_0, window_bounds = array<i64: 16, 128>}, {transform_indices = @transform_1, window_bounds = array<i64: 16, 128>}, {transform_indices = @transform_2, window_bounds = array<i64: 1, 8, 128>}]} {
    %c0_i32 = arith.constant 0 : i32
    %0 = arith.cmpi eq, %arg1, %c0_i32 : i32
    %1 = arith.extui %0 : i1 to i32
    %c0_i32_0 = arith.constant 0 : i32
    %2 = arith.cmpi ne, %1, %c0_i32_0 : i32
    scf.if %2 {
      %cst_11 = arith.constant 0.000000e+00 : f32
      %23 = vector.broadcast %cst_11 : f32 to vector<8x128xf32>
      %c0_12 = arith.constant 0 : index
      %c0_13 = arith.constant 0 : index
      %24 = vector.load %arg5[%c0_12, %c0_13] : memref<8x128xf32, #tpu.memory_space<vmem>>, vector<8x128xf32>
      tpu.vector_store %arg5[%c0_12, %c0_13], %23 {strides = array<i32>} : memref<8x128xf32, #tpu.memory_space<vmem>>, vector<8x128xf32>,
    } else {
    }
    %c0 = arith.constant 0 : index
    %c0_1 = arith.constant 0 : index
    %3 = vector.load %arg2[%c0, %c0_1] : memref<16x128xf32, #tpu.memory_space<vmem>>, vector<16x128xf32>
    %c0_2 = arith.constant 0 : index
    %c0_3 = arith.constant 0 : index
    %4 = vector.load %arg3[%c0_2, %c0_3] : memref<16x128xf32, #tpu.memory_space<vmem>>, vector<16x128xf32>
    %5 = arith.subf %3, %4 : vector<16x128xf32>
    %6 = arith.mulf %5, %5 : vector<16x128xf32>
    %7 = math.absf %4 : vector<16x128xf32>
    %8 = math.absf %3 : vector<16x128xf32>
    %9 = arith.subf %7, %8 : vector<16x128xf32>
    %10 = math.exp %9 : vector<16x128xf32>
    %11 = arith.mulf %6, %10 : vector<16x128xf32>
    %cst = arith.constant 5.000000e-01 : f32
    %12 = vector.broadcast %cst : f32 to vector<16x128xf32>
    %13 = arith.mulf %12, %11 : vector<16x128xf32>
    %14 = arith.addf %6, %13 : vector<16x128xf32>
    %c0_4 = arith.constant 0 : index
    %c0_5 = arith.constant 0 : index
    %15 = vector.load %arg5[%c0_4, %c0_5] : memref<8x128xf32, #tpu.memory_space<vmem>>, vector<8x128xf32>
    %16 = vector.shape_cast %14 : vector<16x128xf32> to vector<2x8x128xf32>
    %cst_6 = arith.constant dense<0.000000e+00> : vector<8x128xf32>
    %17 = vector.multi_reduction <add>, %16, %cst_6 [0] : vector<2x8x128xf32> to vector<8x128xf32>
    %18 = arith.addf %15, %17 : vector<8x128xf32>
    %c0_7 = arith.constant 0 : index
    %c0_8 = arith.constant 0 : index
    %19 = vector.load %arg5[%c0_7, %c0_8] : memref<8x128xf32, #tpu.memory_space<vmem>>, vector<8x128xf32>
    tpu.vector_store %arg5[%c0_7, %c0_8], %18 {strides = array<i32>} : memref<8x128xf32, #tpu.memory_space<vmem>>, vector<8x128xf32>,
    %c0_i32_9 = arith.constant 0 : i32
    %20 = arith.cmpi eq, %arg1, %c0_i32_9 : i32
    %21 = arith.extui %20 : i1 to i32
    %c0_i32_10 = arith.constant 0 : i32
    %22 = arith.cmpi ne, %21, %c0_i32_10 : i32
    scf.if %22 {
      %c0_11 = arith.constant 0 : index
      %c0_12 = arith.constant 0 : index
      %23 = vector.load %arg5[%c0_11, %c0_12] : memref<8x128xf32, #tpu.memory_space<vmem>>, vector<8x128xf32>
      %c0_13 = arith.constant 0 : index
      %c0_14 = arith.constant 0 : index
      %c0_15 = arith.constant 0 : index
      %24 = vector.load %arg4[%c0_13, %c0_14, %c0_15] : memref<1x8x128xf32, #tpu.memory_space<vmem>>, vector<1x8x128xf32>
      %25 = vector.shape_cast %24 : vector<1x8x128xf32> to vector<8x128xf32>
      %26 = vector.shape_cast %23 : vector<8x128xf32> to vector<1x8x128xf32>
      tpu.vector_store %arg4[%c0_13, %c0_14, %c0_15], %26 {strides = array<i32>} : memref<1x8x128xf32, #tpu.memory_space<vmem>>, vector<1x8x128xf32>,
    } else {
    }
    return
  }
  func.func @transform_0(%arg0: i32, %arg1: i32) -> (i32, i32) {
    %c1_i32 = arith.constant 1 : i32
    %0 = arith.muli %arg0, %c1_i32 : i32
    %1 = arith.addi %0, %arg1 : i32
    %c0_i32 = arith.constant 0 : i32
    %2 = arith.minsi %1, %c0_i32 : i32
    %c0_i32_0 = arith.constant 0 : i32
    %c0_i32_1 = arith.constant 0 : i32
    return %2, %c0_i32_0 : i32, i32
  }
  func.func @transform_1(%arg0: i32, %arg1: i32) -> (i32, i32) {
    %c1_i32 = arith.constant 1 : i32
    %0 = arith.muli %arg0, %c1_i32 : i32
    %1 = arith.addi %0, %arg1 : i32
    %c0_i32 = arith.constant 0 : i32
    %2 = arith.minsi %1, %c0_i32 : i32
    %c0_i32_0 = arith.constant 0 : i32
    %c0_i32_1 = arith.constant 0 : i32
    return %2, %c0_i32_0 : i32, i32
  }
  func.func @transform_2(%arg0: i32, %arg1: i32) -> (i32, i32, i32) {
    %c0_i32 = arith.constant 0 : i32
    %c0_i32_0 = arith.constant 0 : i32
    %c0_i32_1 = arith.constant 0 : i32
    return %arg0, %c0_i32, %c0_i32_0 : i32, i32, i32
  }
}

</mosaic_0001>

<bundles_post_ra>
// kernel: tpu_custom_call.1
= control target key start
LH: loop header
LB: loop body
LE: loop exit
PB: predicated region body
PF: predicated region fallthrough
CT: control target
= control target key end

     0   :  { %7 = vsyncpa [#allocation4], 0  ;;  %s255_s0 = inlined_call_operand.hbm [shape: f32[16,128], index: 0, kind: input, shape index: {}]   ;;  %s256_s1 = inlined_call_operand.hbm [shape: f32[16,128], index: 1, kind: input, shape index: {}]   ;;  %s257_s2 = inlined_call_operand.hbm [shape: f32[1,8,128], index: 2, kind: output, shape index: {}]  }
   0x1   :  { %8 = vsyncpa [#allocation7], 0 }
   0x2   :  { %9 = vsyncpa [#allocation5], 0  ;;  %s199_s9 = smov [#allocation3]   ;;  %s127_s13 = scalar_lea.hbm %s255_s0, 256 }
   0x3   :  { %s21_s10 = sshll.u32 %s199_s9, 4  ;;  %p128_p0 = scmp.ne.s32.totalorder %s255_s0, %s127_s13  ;;  %s22_s10 = int_to_ptr.vmem [resolvable:$true] %s21_s10 }
   0x4   :  { %p131_p1 = scmp.lt.u32.totalorder %s127_s13, %s255_s0 }
   0x6   :  { %p133_p2 = pnand %p131_p1, %p128_p0 }
   0x8   :  { %136 = shalt.err (!%p133_p2)
}
   0x9   :  { %s137_s18 = scalar_lea.vmem %s22_s10, 256  ;;  %p142_p4 = scmp.lt.s32.totalorder %s22_s10, %s22_s10 }
   0xa   :  { %p138_p3 = scmp.ne.s32.totalorder %s22_s10, %s137_s18  ;;  %p143_p5 = scmp.lt.s32.totalorder %s137_s18, %s137_s18 }
   0xc   :  { %p144_p6 = por %p143_p5, %p142_p4 }
   0xe   :  { %p145_p7 = pnand %p144_p6, %p138_p3 }
  0x10   :  { %148 = shalt.err (!%p145_p7)
}
  0x11   :  { %s200_s19 = smov 128   ;;  %s201_s20 = smov 8  }
  0x12   :  { %27 = dma.hbm_to_vmem [thread:$0]  %s255_s0, 256, %s22_s10, [#allocation4], %s200_s19, %s200_s19, %s201_s20  }
  0x13   :  { %s202_s23 = smov [#allocation6]   ;;  %s149_s27 = scalar_lea.hbm %s256_s1, 256 }
  0x14   :  { %s39_s24 = sshll.u32 %s202_s23, 4  ;;  %p150_p8 = scmp.ne.s32.totalorder %s256_s1, %s149_s27  ;;  %s40_s24 = int_to_ptr.vmem [resolvable:$true] %s39_s24 }
  0x15   :  { %p153_p9 = scmp.lt.u32.totalorder %s149_s27, %s256_s1 }
  0x17   :  { %p155_p10 = pnand %p153_p9, %p150_p8 }
  0x19   :  { %158 = shalt.err (!%p155_p10)
}
  0x1a   :  { %s159_s4 = scalar_lea.vmem %s40_s24, 256  ;;  %p164_p12 = scmp.lt.s32.totalorder %s40_s24, %s40_s24 }
  0x1b   :  { %p160_p11 = scmp.ne.s32.totalorder %s40_s24, %s159_s4  ;;  %p165_p13 = scmp.lt.s32.totalorder %s159_s4, %s159_s4 }
  0x1d   :  { %p166_p0 = por %p165_p13, %p164_p12 }
  0x1f   :  { %p167_p1 = pnand %p166_p0, %p160_p11 }
  0x21   :  { %170 = shalt.err (!%p167_p1)
}
  0x22   :  { %45 = dma.hbm_to_vmem [thread:$0]  %s256_s1, 256, %s40_s24, [#allocation7], %s200_s19, %s200_s19, %s201_s20  }
  0x23   :  { %193 = dma.done.wait [#allocation4], 256  }
  0x24   :  { %194 = vsyncadd [#allocation4], 4294967040 }
  0x25   :  { %195 = dma.done.wait [#allocation7], 256  }
  0x26   :  { %196 = vsyncadd [#allocation7], 4294967040  ;;  %v65_v0 = vld [vmem:[#allocation3] sm:$0xff]  ;;  %v66_v1 = vld [vmem:[#allocation3 + $0x8] sm:$0xff]  ;;  %s203_s1 = smov [#allocation8]  }
  0x27   :  { %v67_v2 = vld [vmem:[#allocation6] sm:$0xff]  ;;  %v68_v3 = vld [vmem:[#allocation6 + $0x8] sm:$0xff]  ;;  %v75_v5 = vand.u32 2147483647, %v65_v0  ;;  %v76_v7 = vand.u32 2147483647, %v66_v1 }
  0x28   :  { %v73_v4 = vand.u32 2147483647, %v67_v2  ;;  %v74_v6 = vand.u32 2147483647, %v68_v3  ;;  %v69_v12 = vsub.f32 %v65_v0, %v67_v2  ;;  %v70_v13 = vsub.f32 %v66_v1, %v68_v3  ;;  %s104_s6 = sshll.u32 %s203_s1, 4  ;;  %s105_s6 = int_to_ptr.vmem [resolvable:$true] %s104_s6 }
  0x29   :  { %s171_s7 = scalar_lea.vmem %s105_s6, 128  ;;  %p176_p3 = scmp.lt.s32.totalorder %s105_s6, %s105_s6 }
  0x2a   :  { %v77_v8 = vsub.f32 %v73_v4, %v75_v5  ;;  %v78_v9 = vsub.f32 %v74_v6, %v76_v7  ;;  %v71_v14 = vmul.f32 %v69_v12, %v69_v12  ;;  %v72_v15 = vmul.f32 %v70_v13, %v70_v13  ;;  %p172_p2 = scmp.ne.s32.totalorder %s105_s6, %s171_s7  ;;  %p177_p4 = scmp.lt.s32.totalorder %s171_s7, %s171_s7 }
  0x2c   :  { %v79_v10 = vmul.f32 1.442695, %v77_v8  ;;  %v81_v11 = vmul.f32 1.442695, %v78_v9  ;;  %p178_p5 = por %p177_p4, %p176_p3 }
  0x2e   :  { %123 = vpow2.f32 %v79_v10  ;;  %p179_p6 = pnand %p178_p5, %p172_p2 }
  0x2f   :  { %125 = vpow2.f32 %v81_v11 }
  0x38   :  { %v124_v16 = vpop.eup %123 }
  0x39   :  { %v126_v17 = vpop.eup %125  ;;  %v83_v18 = vmul.f32 %v124_v16, %v71_v14 }
  0x3a   :  { %v84_v19 = vmul.f32 %v126_v17, %v72_v15 }
  0x3b   :  { %v85_v20 = vmul.f32 0.5, %v83_v18 }
  0x3c   :  { %v86_v21 = vmul.f32 0.5, %v84_v19 }
  0x3d   :  { %v87_v22 = vadd.f32 %v85_v20, %v71_v14 }
  0x3e   :  { %v88_v23 = vadd.f32 %v86_v21, %v72_v15 }
  0x40   :  { %v90_v24 = vadd.f32 %v88_v23, %v87_v22 }
  0x42   :  { %97 = vst [vmem:[#allocation8] sm:$0xff] %v90_v24 }
  0x43   :  { %182 = shalt.err (!%p179_p6)
}
  0x44   :  { %s183_s10 = scalar_lea.hbm %s257_s2, 128 }
  0x45   :  { %p184_p7 = scmp.ne.s32.totalorder %s257_s2, %s183_s10  ;;  %p187_p8 = scmp.lt.u32.totalorder %s183_s10, %s257_s2 }
  0x47   :  { %p189_p9 = pnand %p187_p8, %p184_p7 }
  0x49   :  { %192 = shalt.err (!%p189_p9)
}
  0x4a   :  { %107 = dma.vmem_to_hbm [thread:$0]  %s105_s6, 128, %s257_s2, [#allocation5]  }
  0x4b   :  { %197 = dma.done.wait [#allocation5], 128  }
  0x4c   :  { %198 = vsyncadd [#allocation5], 4294967168 }
  0x4d   :  { %111 = vsyncpa [#allocation4], 1 }
  0x4e   :  { %112 = vsyncpa [#allocation7], 1 }
  0x4f   :  { %113 = vsyncpa [#allocation5], 1 }

</bundles_post_ra>
